<compile_context>
chip_gen: v7x
topology: tpu7x:2x2x1
jax: 0.10.0
libtpu: 0.0.40
codegen_flags: <defaults>
</compile_context>

<pallas_src>
import jax
import jax.numpy as jnp
from jax.experimental import pallas as pl
from jax.experimental.pallas import tpu as pltpu


def _conv3x3_kernel(wb_ref, x_ref, o_ref):
    # wb_ref : SMEM (10,) f32 -> 9 kernel taps (row-major) + bias
    # x_ref  : VMEM (1, H, W) -> one image; H on sublanes, W on lanes
    # o_ref  : VMEM (1, H, W)
    _, H, W = x_ref.shape
    x = x_ref[0]                                         # (H, W), registers

    # Border-validity masks (hoisted; JAX does not CSE broadcast_in_dim).
    row = jax.lax.broadcasted_iota(jnp.int32, (H, W), 0)
    col = jax.lax.broadcasted_iota(jnp.int32, (H, W), 1)
    not_top = row >= 1         # valid positions for di = -1 (x[i-1, :])
    not_bot = row <= H - 2     # valid positions for di = +1 (x[i+1, :])
    not_left = col >= 1        # dj = -1
    not_right = col <= W - 2   # dj = +1

    # Bias folded into the accumulator init; acc lives in vregs.
    acc = jnp.full((H, W), wb_ref[9], dtype=jnp.float32)

    # y[i,j] = b + sum_{a,b} w[a,b] * x[i+a-1, j+b-1]  (zero-padded border).
    # Horizontal shifts: lane rolls (XLU); vertical shifts: sublane rolls
    # (XLU); wrapped border elements are masked to zero on the VPU.
    for dj, cmask in ((-1, not_left), (0, None), (1, not_right)):
        if dj == 0:
            xc = x
        else:
            xc = jnp.where(cmask, pltpu.roll(x, shift=(-dj) % W, axis=1), 0.0)
        for di, rmask in ((-1, not_top), (0, None), (1, not_bot)):
            if di == 0:
                xr = xc
            else:
                xr = jnp.where(rmask,
                               pltpu.roll(xc, shift=(-di) % H, axis=0), 0.0)
            acc = acc + xr * wb_ref[(di + 1) * 3 + (dj + 1)]

    # Single store of the output tile.
    o_ref[0] = acc


def conv2d_3x3_same(x_nchw, weight, bias):
    """x_nchw: (N, 1, H, W) f32; weight: (1, 1, 3, 3) f32; bias: (1,) f32."""
    N, C, H, W = x_nchw.shape
    assert C == 1

    # Free metadata reshape (no transpose, no extra HBM pass).
    x_nhw = x_nchw.reshape(N, H, W).astype(jnp.float32)

    # 9 taps (row-major) + bias packed as scalars for SMEM.
    wb = jnp.concatenate(
        [weight.reshape(-1).astype(jnp.float32),
         bias.reshape(-1).astype(jnp.float32)]
    )                                                            # (10,)

    cost = pl.CostEstimate(
        flops=18 * N * H * W,              # 9 mul + 9 add per output element
        transcendentals=0,
        bytes_accessed=2 * N * H * W * 4,  # read x once + write y once
    )

    # Explicit scoped-VMEM limit from the block footprint (double-buffered
    # in + out blocks plus in-kernel temporaries), clamped to stay under
    # v7x's 64 MiB physical VMEM.
    block_vmem = 4 * H * W * 4
    vmem_limit = int(min(48 * 1024 * 1024,
                         max(16 * 1024 * 1024, 8 * block_vmem)))

    out_nhw = pl.pallas_call(
        _conv3x3_kernel,
        out_shape=jax.ShapeDtypeStruct((N, H, W), jnp.float32),
        grid_spec=pltpu.PrefetchScalarGridSpec(
            num_scalar_prefetch=0,
            grid=(N,),
            in_specs=[
                pl.BlockSpec(memory_space=pltpu.SMEM),           # wb
                pl.BlockSpec((1, H, W), lambda n: (n, 0, 0)),    # x
            ],
            out_specs=pl.BlockSpec((1, H, W), lambda n: (n, 0, 0)),
        ),
        compiler_params=pltpu.CompilerParams(
            dimension_semantics=("parallel",),
            vmem_limit_bytes=vmem_limit,
        ),
        cost_estimate=cost,
    )(wb, x_nhw)

    return out_nhw.reshape(N, 1, H, W)


def _init_params(key):
    # Deterministic init mirroring nn.Conv2d's uniform(-1/sqrt(fan_in), ...)
    # with fan_in = 1 * 3 * 3 = 9.
    k_w, k_b = jax.random.split(key)
    bound = 1.0 / jnp.sqrt(9.0)
    weight = jax.random.uniform(k_w, (1, 1, 3, 3), jnp.float32, -bound, bound)
    bias = jax.random.uniform(k_b, (1,), jnp.float32, -bound, bound)
    return weight, bias


if __name__ == "__main__":
    key = jax.random.PRNGKey(0)
    k_x, k_p = jax.random.split(key)

    N, C, H, W = 2, 1, 16, 16
    x = jax.random.normal(k_x, (N, C, H, W), jnp.float32)
    weight, bias = _init_params(k_p)

    y = jax.block_until_ready(conv2d_3x3_same(x, weight, bias))

    # Reference check against lax conv (same semantics as torch Conv2d, NCHW).
    y_ref = jax.lax.conv_general_dilated(
        x, weight, window_strides=(1, 1), padding=((1, 1), (1, 1)),
        dimension_numbers=("NCHW", "OIHW", "NCHW"),
    ) + bias.reshape(1, 1, 1, 1)
    assert y.shape == (N, 1, H, W)
    assert jnp.allclose(y, y_ref, atol=1e-5, rtol=1e-5)

    print("KERNEL_OK")
</pallas_src>

<mosaic_0001>
module attributes {stable_mosaic.version = 11 : i64} {
  func.func @_conv3x3_kernel(%arg0: i32, %arg1: memref<10xf32, #tpu.memory_space<smem>>, %arg2: memref<1x16x16xf32, #tpu.memory_space<vmem>>, %arg3: memref<1x16x16xf32, #tpu.memory_space<vmem>>) attributes {dimension_semantics = [#tpu.dimension_semantics<parallel>], iteration_bounds = array<i64: 2>, scalar_prefetch = 0 : i64, scratch_operands = 0 : i64, tpu.core_type = #tpu.core_type<tc>, window_params = [{transform_indices = @transform_0, window_bounds = array<i64: 10>}, {transform_indices = @transform_1, window_bounds = array<i64: 1, 16, 16>}, {transform_indices = @transform_2, window_bounds = array<i64: 1, 16, 16>}]} {
    %c0 = arith.constant 0 : index
    %c0_0 = arith.constant 0 : index
    %c0_1 = arith.constant 0 : index
    %0 = vector.load %arg2[%c0, %c0_0, %c0_1] : memref<1x16x16xf32, #tpu.memory_space<vmem>>, vector<1x16x16xf32>
    %1 = vector.shape_cast %0 : vector<1x16x16xf32> to vector<16x16xf32>
    %2 = tpu.iota {dimensions = array<i32: 0>} : vector<16x16xi32>
    %3 = tpu.iota {dimensions = array<i32: 1>} : vector<16x16xi32>
    %c1_i32 = arith.constant 1 : i32
    %4 = vector.broadcast %c1_i32 : i32 to vector<16x16xi32>
    %5 = arith.cmpi sge, %2, %4 : vector<16x16xi32>
    %c14_i32 = arith.constant 14 : i32
    %6 = vector.broadcast %c14_i32 : i32 to vector<16x16xi32>
    %7 = arith.cmpi sle, %2, %6 : vector<16x16xi32>
    %c1_i32_2 = arith.constant 1 : i32
    %8 = vector.broadcast %c1_i32_2 : i32 to vector<16x16xi32>
    %9 = arith.cmpi sge, %3, %8 : vector<16x16xi32>
    %c14_i32_3 = arith.constant 14 : i32
    %10 = vector.broadcast %c14_i32_3 : i32 to vector<16x16xi32>
    %11 = arith.cmpi sle, %3, %10 : vector<16x16xi32>
    %c9 = arith.constant 9 : index
    %12 = memref.load %arg1[%c9] : memref<10xf32, #tpu.memory_space<smem>>
    %13 = vector.broadcast %12 : f32 to vector<16x16xf32>
    %c1_i32_4 = arith.constant 1 : i32
    %14 = tpu.dynamic_rotate %1 by %c1_i32_4 dim 1 : vector<16x16xf32>, i32 -> vector<16x16xf32>
    %cst = arith.constant 0.000000e+00 : f32
    %15 = vector.broadcast %cst : f32 to vector<16x16xf32>
    %16 = arith.select %9, %14, %15 : vector<16x16xi1>, vector<16x16xf32>
    %c1_i32_5 = arith.constant 1 : i32
    %17 = tpu.dynamic_rotate %16 by %c1_i32_5 dim 0 : vector<16x16xf32>, i32 -> vector<16x16xf32>
    %cst_6 = arith.constant 0.000000e+00 : f32
    %18 = vector.broadcast %cst_6 : f32 to vector<16x16xf32>
    %19 = arith.select %5, %17, %18 : vector<16x16xi1>, vector<16x16xf32>
    %c0_7 = arith.constant 0 : index
    %20 = memref.load %arg1[%c0_7] : memref<10xf32, #tpu.memory_space<smem>>
    %21 = vector.broadcast %20 : f32 to vector<16x16xf32>
    %22 = arith.mulf %19, %21 : vector<16x16xf32>
    %23 = arith.addf %13, %22 : vector<16x16xf32>
    %c3 = arith.constant 3 : index
    %24 = memref.load %arg1[%c3] : memref<10xf32, #tpu.memory_space<smem>>
    %25 = vector.broadcast %24 : f32 to vector<16x16xf32>
    %26 = arith.mulf %16, %25 : vector<16x16xf32>
    %27 = arith.addf %23, %26 : vector<16x16xf32>
    %c15_i32 = arith.constant 15 : i32
    %28 = tpu.dynamic_rotate %16 by %c15_i32 dim 0 : vector<16x16xf32>, i32 -> vector<16x16xf32>
    %cst_8 = arith.constant 0.000000e+00 : f32
    %29 = vector.broadcast %cst_8 : f32 to vector<16x16xf32>
    %30 = arith.select %7, %28, %29 : vector<16x16xi1>, vector<16x16xf32>
    %c6 = arith.constant 6 : index
    %31 = memref.load %arg1[%c6] : memref<10xf32, #tpu.memory_space<smem>>
    %32 = vector.broadcast %31 : f32 to vector<16x16xf32>
    %33 = arith.mulf %30, %32 : vector<16x16xf32>
    %34 = arith.addf %27, %33 : vector<16x16xf32>
    %c1_i32_9 = arith.constant 1 : i32
    %35 = tpu.dynamic_rotate %1 by %c1_i32_9 dim 0 : vector<16x16xf32>, i32 -> vector<16x16xf32>
    %cst_10 = arith.constant 0.000000e+00 : f32
    %36 = vector.broadcast %cst_10 : f32 to vector<16x16xf32>
    %37 = arith.select %5, %35, %36 : vector<16x16xi1>, vector<16x16xf32>
    %c1 = arith.constant 1 : index
    %38 = memref.load %arg1[%c1] : memref<10xf32, #tpu.memory_space<smem>>
    %39 = vector.broadcast %38 : f32 to vector<16x16xf32>
    %40 = arith.mulf %37, %39 : vector<16x16xf32>
    %41 = arith.addf %34, %40 : vector<16x16xf32>
    %c4 = arith.constant 4 : index
    %42 = memref.load %arg1[%c4] : memref<10xf32, #tpu.memory_space<smem>>
    %43 = vector.broadcast %42 : f32 to vector<16x16xf32>
    %44 = arith.mulf %1, %43 : vector<16x16xf32>
    %45 = arith.addf %41, %44 : vector<16x16xf32>
    %c15_i32_11 = arith.constant 15 : i32
    %46 = tpu.dynamic_rotate %1 by %c15_i32_11 dim 0 : vector<16x16xf32>, i32 -> vector<16x16xf32>
    %cst_12 = arith.constant 0.000000e+00 : f32
    %47 = vector.broadcast %cst_12 : f32 to vector<16x16xf32>
    %48 = arith.select %7, %46, %47 : vector<16x16xi1>, vector<16x16xf32>
    %c7 = arith.constant 7 : index
    %49 = memref.load %arg1[%c7] : memref<10xf32, #tpu.memory_space<smem>>
    %50 = vector.broadcast %49 : f32 to vector<16x16xf32>
    %51 = arith.mulf %48, %50 : vector<16x16xf32>
    %52 = arith.addf %45, %51 : vector<16x16xf32>
    %c15_i32_13 = arith.constant 15 : i32
    %53 = tpu.dynamic_rotate %1 by %c15_i32_13 dim 1 : vector<16x16xf32>, i32 -> vector<16x16xf32>
    %cst_14 = arith.constant 0.000000e+00 : f32
    %54 = vector.broadcast %cst_14 : f32 to vector<16x16xf32>
    %55 = arith.select %11, %53, %54 : vector<16x16xi1>, vector<16x16xf32>
    %c1_i32_15 = arith.constant 1 : i32
    %56 = tpu.dynamic_rotate %55 by %c1_i32_15 dim 0 : vector<16x16xf32>, i32 -> vector<16x16xf32>
    %cst_16 = arith.constant 0.000000e+00 : f32
    %57 = vector.broadcast %cst_16 : f32 to vector<16x16xf32>
    %58 = arith.select %5, %56, %57 : vector<16x16xi1>, vector<16x16xf32>
    %c2 = arith.constant 2 : index
    %59 = memref.load %arg1[%c2] : memref<10xf32, #tpu.memory_space<smem>>
    %60 = vector.broadcast %59 : f32 to vector<16x16xf32>
    %61 = arith.mulf %58, %60 : vector<16x16xf32>
    %62 = arith.addf %52, %61 : vector<16x16xf32>
    %c5 = arith.constant 5 : index
    %63 = memref.load %arg1[%c5] : memref<10xf32, #tpu.memory_space<smem>>
    %64 = vector.broadcast %63 : f32 to vector<16x16xf32>
    %65 = arith.mulf %55, %64 : vector<16x16xf32>
    %66 = arith.addf %62, %65 : vector<16x16xf32>
    %c15_i32_17 = arith.constant 15 : i32
    %67 = tpu.dynamic_rotate %55 by %c15_i32_17 dim 0 : vector<16x16xf32>, i32 -> vector<16x16xf32>
    %cst_18 = arith.constant 0.000000e+00 : f32
    %68 = vector.broadcast %cst_18 : f32 to vector<16x16xf32>
    %69 = arith.select %7, %67, %68 : vector<16x16xi1>, vector<16x16xf32>
    %c8 = arith.constant 8 : index
    %70 = memref.load %arg1[%c8] : memref<10xf32, #tpu.memory_space<smem>>
    %71 = vector.broadcast %70 : f32 to vector<16x16xf32>
    %72 = arith.mulf %69, %71 : vector<16x16xf32>
    %73 = arith.addf %66, %72 : vector<16x16xf32>
    %c0_19 = arith.constant 0 : index
    %c0_20 = arith.constant 0 : index
    %c0_21 = arith.constant 0 : index
    %74 = vector.load %arg3[%c0_19, %c0_20, %c0_21] : memref<1x16x16xf32, #tpu.memory_space<vmem>>, vector<1x16x16xf32>
    %75 = vector.shape_cast %74 : vector<1x16x16xf32> to vector<16x16xf32>
    %76 = vector.shape_cast %73 : vector<16x16xf32> to vector<1x16x16xf32>
    tpu.vector_store %arg3[%c0_19, %c0_20, %c0_21], %76 {strides = array<i32>} : memref<1x16x16xf32, #tpu.memory_space<vmem>>, vector<1x16x16xf32>,
    return
  }
  func.func @transform_0(%arg0: i32) -> i32 {
    %c0_i32 = arith.constant 0 : i32
    %c0_i32_0 = arith.constant 0 : i32
    return %c0_i32 : i32
  }
  func.func @transform_1(%arg0: i32) -> (i32, i32, i32) {
    %c0_i32 = arith.constant 0 : i32
    %c0_i32_0 = arith.constant 0 : i32
    %c0_i32_1 = arith.constant 0 : i32
    return %arg0, %c0_i32, %c0_i32_0 : i32, i32, i32
  }
  func.func @transform_2(%arg0: i32) -> (i32, i32, i32) {
    %c0_i32 = arith.constant 0 : i32
    %c0_i32_0 = arith.constant 0 : i32
    %c0_i32_1 = arith.constant 0 : i32
    return %arg0, %c0_i32, %c0_i32_0 : i32, i32, i32
  }
}

</mosaic_0001>

<bundles_post_ra>
// kernel: tpu_custom_call.1
= control target key start
LH: loop header
LB: loop body
LE: loop exit
PB: predicated region body
PF: predicated region fallthrough
CT: control target
= control target key end

     0   :  { %7 = vsyncpa [#allocation5], 0  ;;  %s932_s0 = inlined_call_operand.hbm [shape: f32[10], index: 0, kind: input, shape index: {}]   ;;  %s933_s1 = inlined_call_operand.hbm [shape: f32[2,16,16], index: 1, kind: input, shape index: {}]   ;;  %s934_s2 = inlined_call_operand.hbm [shape: f32[2,16,16], index: 2, kind: output, shape index: {}]  }
   0x1   :  { %8 = vsyncpa [#allocation3], 0 }
   0x2   :  { %10 = vsyncpa [#allocation3 + $0x1], 0 }
   0x3   :  { %11 = vsyncpa [#allocation4], 0 }
   0x4   :  { %13 = vsyncpa [#allocation4 + $0x1], 0  ;;  %s645_s9 = smov 0   ;;  %s647_s10 = smov 0  }
   0x5   :  { %s649_s11 = smov 0   ;;  %s651_s12 = smov 0  }
   0x6 LB: > { %s666_s13 = sadd.s32 4294967295, %s618_s12   ;;  %s414_s14 = sadd.s32 4294967294, %s618_s12   ;;  %s618_s12 = sphi %s651_s12, %s954_s12   ;;  %s614_s11 = sphi %s649_s11, %s953_s11   ;;  %s610_s10 = sphi %s647_s10, %s952_s10   ;;  %s606_s9 = sphi %s645_s9, %s951_s9  }
   0x7   : > { %s670_s15 = sadd.s32 1, %s618_s12   ;;  %s47_s16 = sadd.s32 1, %s614_s11 }
   0x8   : > { %s44_s17 = ssub.s32 %s618_s12, %s670_s15  ;;  %p54_p0 = scmp.ne.s32.totalorder %s614_s11, %s610_s10 }
   0x9   : > { %p45_p1 = scmp.eq.s32.totalorder %s44_s17, 0  ;;  %p55_p2 = scmp.eq.s32.totalorder %s618_s12, 0 }
   0xa   : > { %p60_p3 = scmp.ne.s32.totalorder %s610_s10, %s606_s9  ;;  %p935_p4 = scmp.eq.s32.totalorder %s666_s13, 0 }
   0xb   : > { %s682_s18 = scalar_select %p45_p1, %s614_s11, %s47_s16  }
   0xc   : > { %p684_p5 = por %p55_p2, %p54_p0  ;;  %p690_p6 = por %p935_p4, %p60_p3 }
   0xd   : > { %p84_p7 = scmp.eq.s32.totalorder %s666_s13, 1  ;;  %p90_p8 = scmp.eq.s32.totalorder %s414_s14, 1 }
   0xe   : > { %s939_s20 = scalar_select %p690_p6, 1, 0 }
   0xf   : > { %p415_p9 = scmp.ge.s32.totalorder %s618_s12, 1  ;;  %p97_p10 = scmp.lt.s32.totalorder %s618_s12, 3 }
  0x10   : > { %p697_p11 = por %p84_p7, %p54_p0  ;;  %p701_p12 = por %p90_p8, %p60_p3 }
  0x11   : > { %p705_p13 = pnand %p415_p9, %p97_p10  ;;  %p462_p4 = scmp.lt.s32.totalorder %s618_s12, 2 }
  0x12   : > { %s940_s21 = scalar_select %p697_p11, 1, 0 }
  0x13   : > { %s941_s22 = scalar_select %p701_p12, 1, 0 }
  0x14   : > { %p449_p2 = pneg %p705_p13  ;;  %s119_s24 = sand.u32 1, %s614_s11  }
  0x15   : > { %s439_s25 = sshll.u32 %s618_s12, 8  ;;  %p943_p6 = scmp.eq.s32.totalorder %s666_s13, 0 }
  0x16   : > { %p719_p7 = pnand %p462_p4, %p684_p5  ;;  %s418_s27 = sshll.u32 %s119_s24, 4 }
  0x17   : > { %p450_p0 = pnand %p449_p2, %p943_p6  ;;  %s505_s30 = scalar_lea.hbm %s932_s0, 16 }
  0x18   : > { %p506_p3 = scmp.ne.s32.totalorder %s932_s0, %s505_s30  ;;  %p512_p6 = scmp.lt.u32.totalorder %s505_s30, %s932_s0 }
  0x19   : > { %p507_p8 = pneg %p450_p0 }
  0x1b   : > { %p508_p9 = pnand %p507_p8, %p506_p3 }
  0x1d   : > { %p509_p10 = pneg %p508_p9 }
  0x1f   : > { %p514_p4 = pnand %p512_p6, %p509_p10 }
  0x21   : > { %517 = shalt.err (!%p514_p4)
}
  0x22   : > { %s620_s7 = smov [#allocation2]   ;;  %s738_s19 = scalar_lea.hbm %s933_s1, %s439_s25 }
  0x23   : > { %452 = dma.hbm_to_smem (!%p450_p0), %s932_s0, 16, %s620_s7, [#allocation5]  }
  0x24   : > { %s123_s28 = scalar_lea.vmem [#allocation6], %s418_s27  ;;  %s742_s30 = scalar_lea.sflag [#allocation3], %s119_s24 }
  0x25   : > { %s130_s29 = sshll.u32 %s123_s28, 4  ;;  %s518_s3 = scalar_lea.hbm %s738_s19, 256  ;;  %s740_s29 = int_to_ptr.vmem [resolvable:$true] %s130_s29 }
  0x26   : > { %p519_p5 = scmp.ne.s32.totalorder %s738_s19, %s518_s3  ;;  %p520_p2 = pneg %p719_p7 }
  0x27   : > { %s523_s5 = scalar_lea.hbm %s933_s1, 512  ;;  %p524_p8 = scmp.lt.u32.totalorder %s738_s19, %s933_s1 }
  0x28   : > { %p521_p0 = pnand %p520_p2, %p519_p5  ;;  %p525_p9 = scmp.lt.u32.totalorder %s523_s5, %s518_s3 }
  0x29   : > { %p527_p6 = scmp.lt.u32.totalorder %s518_s3, %s738_s19 }
  0x2a   : > { %p522_p3 = pneg %p521_p0  ;;  %p526_p10 = por %p525_p9, %p524_p8 }
  0x2c   : > { %p528_p4 = por %p527_p6, %p526_p10 }
  0x2e   : > { %p529_p1 = pnand %p528_p4, %p522_p3 }
  0x30   : > { %532 = shalt.err (!%p529_p1)
}
  0x31   : > { %s533_s24 = scalar_lea.vmem %s740_s29, 256  ;;  %s621_s27 = smov [#allocation6]  }
  0x32   : > { %p534_p5 = scmp.ne.s32.totalorder %s740_s29, %s533_s24  ;;  %s538_s8 = sshll.u32 %s621_s27, 4  ;;  %s539_s8 = int_to_ptr.vmem [resolvable:$false] %s538_s8 }
  0x33   : > { %s540_s14 = scalar_lea.vmem %s539_s8, 512  ;;  %p541_p11 = scmp.lt.s32.totalorder %s740_s29, %s539_s8 }
  0x34   : > { %p536_p0 = pnand %p534_p5, %p520_p2  ;;  %p542_p8 = scmp.lt.s32.totalorder %s540_s14, %s533_s24 }
  0x36   : > { %p537_p12 = pneg %p536_p0  ;;  %p543_p9 = por %p542_p8, %p541_p11 }
  0x38   : > { %p544_p10 = pnand %p543_p9, %p537_p12 }
  0x3a   : > { %547 = shalt.err (!%p544_p10)
}
  0x3b   : > { %s622_s16 = smov 128   ;;  %s623_s17 = smov 8  }
  0x3c   : > { %456 = dma.hbm_to_vmem [thread:$0]  (!%p719_p7), %s738_s19, 256, %s740_s29, %s742_s30, %s622_s16, %s622_s16, %s623_s17  }
  0x3d   : > { %142 = sbr.rel (%p705_p13) target bundleno = 467 (0x1d3), region = 28  ;;  %p945_p1 = scmp.eq.s32.totalorder (!%p705_p13), %s666_s13, 0 }
  0x44   : > { %593 = dma.done.wait (%p945_p1), [#allocation5], 16   ;;  %p946_p2 = pmov %p945_p1 }
  0x45   : > { %s777_s28 = sand.u32 1, %s610_s10   ;;  %p947_p11 = scmp.ne.s32.totalorder %s939_s20, 0 }
  0x46   : > { %595 = vsyncadd (%p946_p2), [#allocation5], 4294967280  ;;  %s423_s3 = sshll.u32 %s777_s28, 4  ;;  %s149_s25 = scalar_lea.sflag [#allocation3], %s777_s28 }
  0x47   : > { %s152_s26 = scalar_lea.vmem [#allocation6], %s423_s3 }
  0x48   : > { %597 = dma.done.wait (%p947_p11), %s149_s25, 256  }
  0x49   : > { %599 = vsyncadd (%p947_p11), %s149_s25, 4294967040 }
  0x4a   : > { %157 = sfence }
  0x4b   : > { %v787_v0 = vld [vmem:[%s152_s26] sm:$0xff]  ;;  %s624_s23 = smov 16   ;;  %v790_v1 = vld [vmem:[%s152_s26 + $0x8] sm:$0xff]  ;;  %vm189_vm0 = vcmask 1047680   ;;  %s625_s20 = smov 113   ;;  %v176_v10 = vlaneseq  ;;  %vm312_vm7 = vcmask 130048  }
  0x4c   : > { %190 = vrot.lane.b32.xlu0 %v787_v0, %s624_s23  ;;  %s626_s19 = smov 127   ;;  %s797_s29 = sld [smem:[#allocation2]]  ;;  %v245_v14 = vrot.slane %v790_v1, 7  ;;  %v244_v15 = vrot.slane %v787_v0, 7  ;;  %v263_v24 = vrot.slane %v790_v1, 1  ;;  %v262_v25 = vrot.slane %v787_v0, 1 }
  0x4d   : > { %v180_v11 = vand.u32 127, %v176_v10  ;;  %s799_s30 = sld [smem:[#allocation2 + $0x1]]  ;;  %v801_v12 = vshrl.u32 %v176_v10, 7  ;;  %s803_s4 = sld [smem:[#allocation2 + $0x3]] }
  0x4e   : > { %s805_s5 = sld [smem:[#allocation2 + $0x9]]  ;;  %s807_s6 = sld [smem:[#allocation2 + $0x6]] }
  0x4f   : > { %vm185_vm1 = vcmp.ge.s32.totalorder %v180_v11, 1  ;;  %vm214_vm2 = vcmp.lt.s32.totalorder %v801_v12, 1  ;;  %vm233_vm3 = vcmp.lt.s32.totalorder %v801_v12, 7  ;;  %v814_v17 = vadd.s32 8, %v801_v12  ;;  %s821_s7 = sld [smem:[#allocation2 + $0x4]]  ;;  %s826_s24 = sld [smem:[#allocation2 + $0x7]] }
  0x50   : > { %193 = vrot.lane.b32.xlu0 %v790_v1, %s624_s23  ;;  %vm181_vm4 = vcmp.ge.s32.totalorder %v801_v12, 1  ;;  %v246_v21 = vsel %vm214_vm2, %v244_v15, %v245_v14  ;;  %v247_v23 = vsel %vm214_vm2, %v245_v14, %v244_v15  ;;  %vm186_vm6 = vcmp.le.s32.totalorder %v180_v11, 14  ;;  %s845_s27 = sld [smem:[#allocation2 + $0x2]]  ;;  %s854_s8 = sld [smem:[#allocation2 + $0x5]] }
  0x51   : > { %vm184_vm5 = vcmp.le.s32.totalorder %v814_v17, 14  ;;  %v248_v40 = vsel %vm181_vm4, %v247_v23, 0.0  ;;  %v265_v44 = vsel %vm233_vm3, %v263_v24, %v262_v25  ;;  %s857_s14 = sld [smem:[#allocation2 + $0x8]]  ;;  %s440_s16 = sshll.u32 %s666_s13, 8 }
  0x52   : > { %v220_v18 = vstv %s797_s29  ;;  %v267_v61 = vsel %vm184_vm5, %v265_v44, 0.0  ;;  %s173_s17 = scalar_lea.vmem [#allocation7], %s423_s3  ;;  %s316_s13 = scalar_lea.sflag [#allocation4], %s777_s28 }
  0x53   : > { %v251_v19 = vstv %s799_s30  ;;  %v226_v30 = vstv %s803_s4  ;;  %s329_s25 = sshll.u32 %s173_s17, 4  ;;  %p948_p13 = scmp.ne.s32.totalorder %s940_s21, 0  ;;  %s888_s25 = int_to_ptr.vmem [resolvable:$true] %s329_s25 }
  0x54   : > { %v188_v31 = vstv %s805_s5  ;;  %v239_v32 = vstv %s807_s6  ;;  %v253_v41 = vmul.f32 %v251_v19, %v246_v21  ;;  %v252_v56 = vmul.f32 %v251_v19, %v248_v40  ;;  %s548_s3 = scalar_lea.vmem %s888_s25, 256 }
  0x55   : > { %v257_v52 = vstv %s821_s7  ;;  %v269_v57 = vstv %s826_s24  ;;  %p549_p12 = scmp.ne.s32.totalorder %s888_s25, %s548_s3 }
  0x56   : > { %v259_v63 = vmul.f32 %v257_v52, %v790_v1  ;;  %v289_v11 = vstv %s845_s27 }
  0x57   : > { %v307_v21 = vstv %s857_s14  ;;  %p550_p7 = pnand %p549_p12, %p948_p13 }
  0x59   : > { %p551_p3 = pneg %p550_p7 }
  0xbe   : > { %v191_v2 = vpop.permute.xlu0 %190 }
  0xbf   : > { %v192_v3 = vsel %vm189_vm0, %v191_v2, %v787_v0  ;;  %v264_v2 = vsel %vm233_vm3, %v262_v25, %v263_v24 }
  0xc0   : > { %196 = vrot.lane.b32.xlu1 %v192_v3, %s624_s23 }
  0xc2   : > { %v194_v4 = vpop.permute.xlu0 %193 }
  0xc3   : > { %v195_v5 = vsel %vm189_vm0, %v194_v4, %v790_v1 }
  0xc4   : > { %198 = vrot.lane.b32.xlu1 %v195_v5, %s624_s23  ;;  %v258_v5 = vmul.f32 %v257_v52, %v787_v0 }
 0x132   : > { %v197_v6 = vpop.permute.xlu1 %196 }
 0x133   : > { %v200_v7 = vsel %vm189_vm0, %v197_v6, %v787_v0 }
 0x134   : > { %204 = vrot.lane.b32.xlu0 %v200_v7, %s625_s20 }
 0x136   : > { %v199_v8 = vpop.permute.xlu1 %198 }
 0x137   : > { %v201_v9 = vsel %vm189_vm0, %v199_v8, %v790_v1 }
 0x138   : > { %274 = vrot.lane.b32.xlu0 %v200_v7, %s626_s19  ;;  %206 = vrot.lane.b32.xlu1 %v201_v9, %s625_s20  ;;  %s886_s20 = scalar_lea.hbm %s934_s2, %s440_s16 }
 0x13c   : > { %276 = vrot.lane.b32.xlu1 %v201_v9, %s626_s19  ;;  %v271_v9 = vmul.f32 %v269_v57, %v267_v61  ;;  %s627_s19 = smov [#allocation7]  }
 0x13d   : > { %s552_s29 = sshll.u32 %s627_s19, 4  ;;  %s553_s29 = int_to_ptr.vmem [resolvable:$false] %s552_s29 }
 0x13e   : > { %s554_s30 = scalar_lea.vmem %s553_s29, 512  ;;  %p555_p6 = scmp.lt.s32.totalorder %s888_s25, %s553_s29 }
 0x13f   : > { %p556_p4 = scmp.lt.s32.totalorder %s554_s30, %s548_s3 }
 0x141   : > { %p557_p5 = por %p556_p4, %p555_p6 }
 0x143   : > { %p558_p0 = pnand %p557_p5, %p551_p3 }
 0x1a6   : > { %v205_v13 = vpop.permute.xlu0 %204 }
 0x1a7   : > { %v210_v16 = vsel %vm185_vm1, %v205_v13, 0.0  ;;  %v270_v13 = vmul.f32 %v269_v57, %v264_v2 }
 0x1a8   : > { %v212_v26 = vrot.slane %v210_v16, 7  ;;  %v231_v27 = vrot.slane %v210_v16, 1  ;;  %v227_v50 = vmul.f32 %v226_v30, %v210_v16 }
 0x1aa   : > { %v207_v20 = vpop.permute.xlu1 %206  ;;  %v275_v36 = vpop.permute.xlu0 %274 }
 0x1ab   : > { %v211_v22 = vsel %vm185_vm1, %v207_v20, 0.0  ;;  %v280_v49 = vsel %vm186_vm6, %v275_v36, 0.0 }
 0x1ac   : > { %v213_v28 = vrot.slane %v211_v22, 7  ;;  %v232_v29 = vrot.slane %v211_v22, 1  ;;  %v228_v47 = vmul.f32 %v226_v30, %v211_v22  ;;  %v282_v60 = vrot.slane %v280_v49, 7 }
 0x1ad   : > { %v300_v8 = vrot.slane %v280_v49, 1 }
 0x1ae   : > { %v215_v33 = vsel %vm214_vm2, %v212_v26, %v213_v28  ;;  %v216_v34 = vsel %vm214_vm2, %v213_v28, %v212_v26  ;;  %v235_v35 = vsel %vm233_vm3, %v232_v29, %v231_v27  ;;  %v277_v37 = vpop.permute.xlu1 %276  ;;  %v234_v48 = vsel %vm233_vm3, %v231_v27, %v232_v29 }
 0x1af   : > { %v217_v38 = vsel %vm181_vm4, %v216_v34, 0.0  ;;  %v222_v39 = vmul.f32 %v220_v18, %v215_v33  ;;  %v237_v43 = vsel %vm184_vm5, %v235_v35, 0.0  ;;  %v281_v45 = vsel %vm186_vm6, %v277_v37, 0.0 }
 0x1b0   : > { %v221_v42 = vmul.f32 %v220_v18, %v217_v38  ;;  %v283_v53 = vrot.slane %v281_v45, 7  ;;  %v241_v55 = vmul.f32 %v239_v32, %v237_v43  ;;  %v240_v59 = vmul.f32 %v239_v32, %v234_v48 }
 0x1b1   : > { %v224_v46 = vadd.f32 %v222_v39, %v188_v31  ;;  %v301_v3 = vrot.slane %v281_v45, 1  ;;  %v295_v18 = vstv %s854_s8 }
 0x1b2   : > { %v223_v51 = vadd.f32 %v221_v42, %v188_v31  ;;  %v285_v6 = vsel %vm214_vm2, %v283_v53, %v282_v60  ;;  %v284_v1 = vsel %vm214_vm2, %v282_v60, %v283_v53  ;;  %v297_v26 = vmul.f32 %v295_v18, %v281_v45 }
 0x1b3   : > { %v230_v54 = vadd.f32 %v228_v47, %v224_v46  ;;  %v286_v15 = vsel %vm181_vm4, %v285_v6, 0.0  ;;  %v303_v0 = vsel %vm233_vm3, %v301_v3, %v300_v8  ;;  %v291_v20 = vmul.f32 %v289_v11, %v284_v1 }
 0x1b4   : > { %v229_v58 = vadd.f32 %v227_v50, %v223_v51  ;;  %v290_v23 = vmul.f32 %v289_v11, %v286_v15  ;;  %v305_v24 = vsel %vm184_vm5, %v303_v0, 0.0  ;;  %v302_v27 = vsel %vm233_vm3, %v300_v8, %v301_v3 }
 0x1b5   : > { %v243_v62 = vadd.f32 %v241_v55, %v230_v54  ;;  %v296_v28 = vmul.f32 %v295_v18, %v280_v49  ;;  %v309_v31 = vmul.f32 %v307_v21, %v305_v24  ;;  %v308_v33 = vmul.f32 %v307_v21, %v302_v27 }
 0x1b6   : > { %v242_v4 = vadd.f32 %v240_v59, %v229_v58 }
 0x1b7   : > { %v255_v7 = vadd.f32 %v253_v41, %v243_v62 }
 0x1b8   : > { %v254_v10 = vadd.f32 %v252_v56, %v242_v4 }
 0x1b9   : > { %v261_v14 = vadd.f32 %v259_v63, %v255_v7 }
 0x1ba   : > { %v260_v16 = vadd.f32 %v258_v5, %v254_v10 }
 0x1bb   : > { %v273_v19 = vadd.f32 %v271_v9, %v261_v14 }
 0x1bc   : > { %v272_v22 = vadd.f32 %v270_v13, %v260_v16 }
 0x1bd   : > { %v293_v25 = vadd.f32 %v291_v20, %v273_v19 }
 0x1be   : > { %v292_v29 = vadd.f32 %v290_v23, %v272_v22 }
 0x1bf   : > { %v299_v30 = vadd.f32 %v297_v26, %v293_v25 }
 0x1c0   : > { %v298_v32 = vadd.f32 %v296_v28, %v292_v29 }
 0x1c1   : > { %v311_v17 = vadd.f32 %v309_v31, %v299_v30 }
 0x1c2   : > { %v310_v12 = vadd.f32 %v308_v33, %v298_v32 }
 0x1c3   : > { %314 = vst.msk [vmem:[%s173_s17 + $0x8] sm:$0xff] %vm312_vm7, %v311_v17 }
 0x1c4   : > { %313 = vst.msk [vmem:[%s173_s17] sm:$0xff] %vm312_vm7, %v310_v12 }
 0x1c5   : > { %561 = shalt.err (!%p558_p0)
}
 0x1c6   : > { %s562_s4 = scalar_lea.hbm %s886_s20, 256  ;;  %s566_s7 = scalar_lea.hbm %s934_s2, 512 }
 0x1c7   : > { %p563_p8 = scmp.ne.s32.totalorder %s886_s20, %s562_s4  ;;  %p567_p1 = scmp.lt.u32.totalorder %s886_s20, %s934_s2 }
 0x1c8   : > { %p568_p2 = scmp.lt.u32.totalorder %s566_s7, %s562_s4  ;;  %p570_p12 = scmp.lt.u32.totalorder %s562_s4, %s886_s20 }
 0x1c9   : > { %p564_p9 = pnand %p563_p8, %p948_p13 }
 0x1ca   : > { %p569_p11 = por %p568_p2, %p567_p1 }
 0x1cb   : > { %p565_p10 = pneg %p564_p9 }
 0x1cc   : > { %p571_p7 = por %p570_p12, %p569_p11 }
 0x1ce   : > { %p572_p3 = pnand %p571_p7, %p565_p10 }
 0x1d0   : > { %575 = shalt.err (!%p572_p3)
}
 0x1d1   : > { %s628_s8 = smov 128   ;;  %s629_s14 = smov 8  }
 0x1d2   : > { %447 = dma.vmem_to_hbm [thread:$0]  (%p948_p13), %s888_s25, 256, %s886_s20, %s316_s13, %s628_s8, %s628_s8, %s629_s14  }
 0x1d3 PF: > { %s344_s16 = sand.u32 1, %s606_s9   ;;  %p949_p6 = scmp.ne.s32.totalorder %s941_s22, 0 }
 0x1d4   : > { %p950_p4 = scmp.ge.s32.totalorder %s618_s12, 2  ;;  %s345_s17 = scalar_lea.sflag [#allocation4], %s344_s16 }
 0x1d6   : > { %p458_p5 = pnand %p950_p4, %p949_p6 }
 0x1d8   : > { %601 = dma.done.wait (!%p458_p5), %s345_s17, 256  }
 0x1d9   : > { %603 = vsyncadd (!%p458_p5), %s345_s17, 4294967040  ;;  %p16_p0 = scmp.ge.s32.totalorder %s670_s15, 4   ;;  %s951_s9 = smov %s610_s10 }
 0x1da   : > { %s952_s10 = smov %s614_s11  ;;  %s953_s11 = smov %s682_s18 }
 0x1db   : > { %s954_s12 = smov %s670_s15  ;;  %18 = sbr.rel (!%p16_p0) target bundleno = 6 (0x6), region = 78 }
 0x1e2   :  { %350 = vsyncpa [#allocation3], 1 }
 0x1e3   :  { %352 = vsyncpa [#allocation3 + $0x1], 1 }
 0x1e4   :  { %353 = vsyncpa [#allocation4], 1 }
 0x1e5   :  { %355 = vsyncpa [#allocation4 + $0x1], 1 }
 0x1e6   :  { %356 = vsyncpa [#allocation5], 1 }
 0x1e7   :  { %358 = vsyncpa [#allocation5 + $0x1], 1 }

</bundles_post_ra>
